<compile_context>
chip_gen: v7x
topology: tpu7x:2x2x1
jax: 0.10.0
libtpu: 0.0.40
codegen_flags: <defaults>
</compile_context>

<pallas_src>
import math

import jax
import jax.numpy as jnp
from jax.experimental import pallas as pl
from jax.experimental.pallas import tpu as pltpu


def _round_up(a: int, b: int) -> int:
    return ((a + b - 1) // b) * b


def _pad_to(x, axis: int, multiple: int):
    pad = (-x.shape[axis]) % multiple
    if pad == 0:
        return x
    widths = [(0, 0)] * x.ndim
    widths[axis] = (0, pad)
    return jnp.pad(x, widths)


def _linear_relu_kernel(x_ref, w_ref, b_ref, o_ref, acc_ref):
    # x_ref: (tm, tk)   activation tile
    # w_ref: (tk, tn)   weight tile (already transposed to (in, out))
    # b_ref: (1, tn)    bias tile (lane-dense)
    # o_ref: (tm, tn)   output tile
    # acc_ref: (tm, tn) f32 accumulator, persistent across the K grid axis
    k = pl.program_id(2)

    @pl.when(k == 0)
    def _():
        acc_ref[...] = jnp.zeros_like(acc_ref)

    acc_ref[...] += jnp.dot(
        x_ref[...], w_ref[...], preferred_element_type=jnp.float32
    )

    @pl.when(k == pl.num_programs(2) - 1)
    def _():
        y = acc_ref[...] + b_ref[...].astype(jnp.float32)  # (tm,tn) + (1,tn)
        o_ref[...] = jnp.maximum(y, 0.0).astype(o_ref.dtype)  # ReLU epilogue


def linear_layer_forward(x, weight, bias):
    """Forward of LinearLayer(in_c, out_c, bias=True, batchnorm=False,
    nonlinearity='relu'): flatten(start_dim=1) -> x @ W.T + b -> relu."""
    if x.ndim > 2:
        x = x.reshape(x.shape[0], -1)          # torch .flatten(start_dim=1)
    M, K = x.shape
    N, Kw = weight.shape                        # PyTorch weight is (out, in)
    assert Kw == K, "weight in_features mismatch"

    w = weight.T                                # (K, N): kernel does x @ w
    b = bias.reshape(1, N)

    # Tile sizes: lane-dense output (tn multiple of 128), MXU-friendly depth.
    tm = min(256, _round_up(M, 8))
    tn = min(256, _round_up(N, 128))
    tk = min(512, _round_up(K, 128))

    # Pad to tile boundaries (no-ops for already-aligned shapes).
    xp = _pad_to(_pad_to(x, 0, tm), 1, tk)
    wp = _pad_to(_pad_to(w, 0, tk), 1, tn)
    bp = _pad_to(b, 1, tn)
    Mp, Kp = xp.shape
    Np = wp.shape[1]

    grid = (Mp // tm, Np // tn, Kp // tk)

    out = pl.pallas_call(
        _linear_relu_kernel,
        out_shape=jax.ShapeDtypeStruct((Mp, Np), x.dtype),
        grid_spec=pltpu.PrefetchScalarGridSpec(
            num_scalar_prefetch=0,
            grid=grid,
            in_specs=[
                pl.BlockSpec((tm, tk), lambda i, j, k: (i, k)),
                pl.BlockSpec((tk, tn), lambda i, j, k: (k, j)),
                pl.BlockSpec((1, tn), lambda i, j, k: (0, j)),
            ],
            out_specs=pl.BlockSpec((tm, tn), lambda i, j, k: (i, j)),
            scratch_shapes=[pltpu.VMEM((tm, tn), jnp.float32)],
        ),
        compiler_params=pltpu.CompilerParams(
            dimension_semantics=("parallel", "parallel", "arbitrary"),
            vmem_limit_bytes=64 * 1024 * 1024,
        ),
    )(xp, wp, bp)

    if (Mp, Np) != (M, N):
        out = out[:M, :N]
    return out


if __name__ == "__main__":
    # Module config: LinearLayer(in_channels=1024, out_channels=256,
    #                            bias=True, batchnorm=False, nonlinearity='relu')
    # Input is 4-D so the forward exercises the flatten(start_dim=1) path:
    # (8, 4, 16, 16) -> (8, 1024).
    N_BATCH, C, H, W = 8, 4, 16, 16
    IN_FEATURES = C * H * W       # 1024
    OUT_FEATURES = 256

    key = jax.random.PRNGKey(0)
    kx, kw = jax.random.split(key)

    x = jax.random.normal(kx, (N_BATCH, C, H, W), dtype=jnp.float32)

    # Deterministic init matching Layer.init_weights:
    # kaiming_normal_(nonlinearity='relu') -> std = sqrt(2 / fan_in); bias = 0.01
    std = math.sqrt(2.0 / IN_FEATURES)
    weight = std * jax.random.normal(
        kw, (OUT_FEATURES, IN_FEATURES), dtype=jnp.float32
    )
    bias = jnp.full((OUT_FEATURES,), 0.01, dtype=jnp.float32)

    out = linear_layer_forward(x, weight, bias)
    out = jax.block_until_ready(out)

    # Correctness check against a plain-JAX reference.
    x_flat = x.reshape(N_BATCH, -1)
    ref = jnp.maximum(x_flat @ weight.T + bias[None, :], 0.0)
    assert out.shape == (N_BATCH, OUT_FEATURES)
    assert jnp.allclose(out, ref, atol=1e-4, rtol=1e-4)

    # TODO(synk): batchnorm branch (batchnorm=True) not implemented; module default is False.
    print("KERNEL_OK")
</pallas_src>

<mosaic_0001>
module attributes {stable_mosaic.version = 11 : i64} {
  func.func @_linear_relu_kernel(%arg0: i32, %arg1: i32, %arg2: i32, %arg3: memref<8x512xf32, #tpu.memory_space<vmem>>, %arg4: memref<512x256xf32, #tpu.memory_space<vmem>>, %arg5: memref<1x256xf32, #tpu.memory_space<vmem>>, %arg6: memref<8x256xf32, #tpu.memory_space<vmem>>, %arg7: memref<8x256xf32, #tpu.memory_space<vmem>>) attributes {dimension_semantics = [#tpu.dimension_semantics<parallel>, #tpu.dimension_semantics<parallel>, #tpu.dimension_semantics<arbitrary>], iteration_bounds = array<i64: 1, 1, 2>, scalar_prefetch = 0 : i64, scratch_operands = 1 : i64, tpu.core_type = #tpu.core_type<tc>, window_params = [{transform_indices = @transform_0, window_bounds = array<i64: 8, 512>}, {transform_indices = @transform_1, window_bounds = array<i64: 512, 256>}, {transform_indices = @transform_2, window_bounds = array<i64: 1, 256>}, {transform_indices = @transform_3, window_bounds = array<i64: 8, 256>}]} {
    %c0_i32 = arith.constant 0 : i32
    %0 = arith.cmpi eq, %arg2, %c0_i32 : i32
    %1 = arith.extui %0 : i1 to i32
    %c0_i32_0 = arith.constant 0 : i32
    %2 = arith.cmpi ne, %1, %c0_i32_0 : i32
    scf.if %2 {
      %cst_9 = arith.constant 0.000000e+00 : f32
      %12 = vector.broadcast %cst_9 : f32 to vector<8x256xf32>
      %c0_10 = arith.constant 0 : index
      %c0_11 = arith.constant 0 : index
      %13 = vector.load %arg7[%c0_10, %c0_11] : memref<8x256xf32, #tpu.memory_space<vmem>>, vector<8x256xf32>
      tpu.vector_store %arg7[%c0_10, %c0_11], %12 {strides = array<i32>} : memref<8x256xf32, #tpu.memory_space<vmem>>, vector<8x256xf32>,
    } else {
    }
    %c0 = arith.constant 0 : index
    %c0_1 = arith.constant 0 : index
    %3 = vector.load %arg7[%c0, %c0_1] : memref<8x256xf32, #tpu.memory_space<vmem>>, vector<8x256xf32>
    %c0_2 = arith.constant 0 : index
    %c0_3 = arith.constant 0 : index
    %4 = vector.load %arg3[%c0_2, %c0_3] : memref<8x512xf32, #tpu.memory_space<vmem>>, vector<8x512xf32>
    %c0_4 = arith.constant 0 : index
    %c0_5 = arith.constant 0 : index
    %5 = vector.load %arg4[%c0_4, %c0_5] : memref<512x256xf32, #tpu.memory_space<vmem>>, vector<512x256xf32>
    %cst = arith.constant dense<0.000000e+00> : vector<8x256xf32>
    %6 = tpu.matmul %4, %5, %cst {dimension_numbers = #tpu.dot_dimension_numbers<[1], [0], [0], [1], [0, 0, 1, 1], [], []>} : vector<8x512xf32>, vector<512x256xf32>, vector<8x256xf32> -> vector<8x256xf32>
    %7 = arith.addf %3, %6 : vector<8x256xf32>
    %c0_6 = arith.constant 0 : index
    %c0_7 = arith.constant 0 : index
    %8 = vector.load %arg7[%c0_6, %c0_7] : memref<8x256xf32, #tpu.memory_space<vmem>>, vector<8x256xf32>
    tpu.vector_store %arg7[%c0_6, %c0_7], %7 {strides = array<i32>} : memref<8x256xf32, #tpu.memory_space<vmem>>, vector<8x256xf32>,
    %c1_i32 = arith.constant 1 : i32
    %9 = arith.cmpi eq, %arg2, %c1_i32 : i32
    %10 = arith.extui %9 : i1 to i32
    %c0_i32_8 = arith.constant 0 : i32
    %11 = arith.cmpi ne, %10, %c0_i32_8 : i32
    scf.if %11 {
      %c0_9 = arith.constant 0 : index
      %c0_10 = arith.constant 0 : index
      %12 = vector.load %arg7[%c0_9, %c0_10] : memref<8x256xf32, #tpu.memory_space<vmem>>, vector<8x256xf32>
      %c0_11 = arith.constant 0 : index
      %c0_12 = arith.constant 0 : index
      %13 = vector.load %arg5[%c0_11, %c0_12] : memref<1x256xf32, #tpu.memory_space<vmem>>, vector<1x256xf32>
      %14 = vector.broadcast %13 : vector<1x256xf32> to vector<8x256xf32>
      %15 = arith.addf %12, %14 : vector<8x256xf32>
      %cst_13 = arith.constant 0.000000e+00 : f32
      %16 = vector.broadcast %cst_13 : f32 to vector<8x256xf32>
      %17 = arith.maximumf %15, %16 : vector<8x256xf32>
      %c0_14 = arith.constant 0 : index
      %c0_15 = arith.constant 0 : index
      %18 = vector.load %arg6[%c0_14, %c0_15] : memref<8x256xf32, #tpu.memory_space<vmem>>, vector<8x256xf32>
      tpu.vector_store %arg6[%c0_14, %c0_15], %17 {strides = array<i32>} : memref<8x256xf32, #tpu.memory_space<vmem>>, vector<8x256xf32>,
    } else {
    }
    return
  }
  func.func @transform_0(%arg0: i32, %arg1: i32, %arg2: i32) -> (i32, i32) {
    %c0_i32 = arith.constant 0 : i32
    return %arg0, %arg2 : i32, i32
  }
  func.func @transform_1(%arg0: i32, %arg1: i32, %arg2: i32) -> (i32, i32) {
    %c0_i32 = arith.constant 0 : i32
    return %arg2, %arg1 : i32, i32
  }
  func.func @transform_2(%arg0: i32, %arg1: i32, %arg2: i32) -> (i32, i32) {
    %c0_i32 = arith.constant 0 : i32
    %c0_i32_0 = arith.constant 0 : i32
    return %c0_i32, %arg1 : i32, i32
  }
  func.func @transform_3(%arg0: i32, %arg1: i32, %arg2: i32) -> (i32, i32) {
    %c0_i32 = arith.constant 0 : i32
    return %arg0, %arg1 : i32, i32
  }
}

</mosaic_0001>

<bundles_post_ra>
// kernel: tpu_custom_call.1
= control target key start
LH: loop header
LB: loop body
LE: loop exit
PB: predicated region body
PF: predicated region fallthrough
CT: control target
= control target key end

     0   :  { %8 = vsyncpa [#allocation4], 0  ;;  %s1520_s0 = inlined_call_operand.hbm [shape: f32[8,1024], index: 0, kind: input, shape index: {}]   ;;  %s1521_s1 = inlined_call_operand.hbm [shape: f32[1024,256], index: 1, kind: input, shape index: {}]   ;;  %s1522_s2 = inlined_call_operand.hbm [shape: f32[1,256], index: 2, kind: input, shape index: {}]   ;;  %s1523_s3 = inlined_call_operand.hbm [shape: f32[8,256], index: 3, kind: output, shape index: {}]  }
   0x1   :  { %10 = vsyncpa [#allocation4 + $0x1], 0 }
   0x2   :  { %11 = vsyncpa [#allocation7], 0 }
   0x3   :  { %13 = vsyncpa [#allocation7 + $0x1], 0 }
   0x4   :  { %14 = vsyncpa [#allocation5], 0  ;;  %s1144_s12 = smov 0   ;;  %s1146_s13 = smov 0  }
   0x5   :  { %s1148_s14 = smov 0   ;;  %s1150_s15 = smov 0  }
   0x6   :  { %s1152_s16 = smov 0   ;;  %s1154_s17 = smov 0  }
   0x7 LB: > { %s1173_s18 = sadd.s32 4294967295, %s1115_s17   ;;  %s48_s19 = sadd.s32 1, %s1103_s14  ;;  %s1115_s17 = sphi %s1154_s17, %s20_s17   ;;  %s1111_s16 = sphi %s1152_s16, %s1544_s16   ;;  %s1107_s15 = sphi %s1150_s15, %s1543_s15   ;;  %s1103_s14 = sphi %s1148_s14, %s1542_s14   ;;  %s1099_s13 = sphi %s1146_s13, %s1541_s13   ;;  %s1095_s12 = sphi %s1144_s12, %s1540_s12  }
   0x8   : > { %p55_p0 = scmp.ne.s32.totalorder %s1103_s14, %s1099_s13  ;;  %p61_p1 = scmp.ne.s32.totalorder %s1099_s13, %s1095_s12 }
   0x9   : > { %p1524_p2 = scmp.eq.s32.totalorder %s1173_s18, 0  ;;  %p705_p3 = scmp.ge.s32.totalorder %s1115_s17, 1 }
   0xa   : > { %p154_p4 = scmp.lt.s32.totalorder %s1115_s17, 3  ;;  %s1117_s22 = smov [#allocation8]  }
   0xb   : > { %p1184_p5 = por %p1524_p2, %p61_p1  ;;  %s170_s23 = sshll.u32 %s1117_s22, 4  ;;  %s171_s23 = int_to_ptr.vmem [resolvable:$true] %s170_s23 }
   0xc   : > { %p1188_p6 = pnand %p705_p3, %p154_p4  ;;  %p56_p8 = scmp.eq.s32.totalorder %s1115_s17, 0 }
   0xd   : > { %s1527_s20 = scalar_select %p1184_p5, 1, 0 }
   0xe   : > { %s1528_s21 = scalar_select %p1188_p6, 1, 0 }
   0xf   : > { %p870_p7 = pneg %p1188_p6  ;;  %s32_s25 = sadd.s32 1, %s1111_s16 }
  0x10   : > { %p1202_p10 = scmp.ge.s32.totalorder %s32_s25, 2  ;;  %p1209_p11 = por %p56_p8, %p55_p0 }
  0x11   : > { %p1197_p9 = pnand %p870_p7, %p1524_p2  ;;  %s939_s30 = scalar_lea.hbm %s1522_s2, 32 }
  0x12   : > { %s1530_s26 = scalar_select %p1202_p10, 1, 0 }
  0x13   : > { %s1531_s27 = scalar_select %p1209_p11, 1, 0 }
  0x14   : > { %p940_p13 = scmp.ne.s32.totalorder %s1522_s2, %s939_s30  ;;  %p941_p1 = pneg %p1197_p9 }
  0x15   : > { %p946_p0 = scmp.lt.u32.totalorder %s939_s30, %s1522_s2 }
  0x16   : > { %p942_p3 = pnand %p941_p1, %p940_p13 }
  0x18   : > { %p943_p4 = pneg %p942_p3 }
  0x1a   : > { %p948_p7 = pnand %p946_p0, %p943_p4 }
  0x1c   : > { %951 = shalt.err (!%p948_p7)
}
  0x1d   : > { %s952_s8 = scalar_lea.vmem %s171_s23, 32  ;;  %p960_p5 = scmp.lt.s32.totalorder %s171_s23, %s171_s23 }
  0x1e   : > { %p953_p8 = scmp.ne.s32.totalorder %s171_s23, %s952_s8  ;;  %p961_p6 = scmp.lt.s32.totalorder %s952_s8, %s952_s8 }
  0x20   : > { %p955_p2 = pnand %p953_p8, %p941_p1  ;;  %p962_p11 = por %p961_p6, %p960_p5 }
  0x22   : > { %p956_p12 = pneg %p955_p2 }
  0x24   : > { %p963_p10 = pnand %p962_p11, %p956_p12 }
  0x26   : > { %966 = shalt.err (!%p963_p10)
}
  0x27   : > { %873 = dma.hbm_to_vmem [thread:$0]  (!%p1197_p9), %s1522_s2, 32, %s171_s23, [#allocation7]  }
  0x28   : > { %p1532_p2 = scmp.ne.s32.totalorder %s1530_s26, 0  ;;  %s1235_s11 = sand.u32 1, %s1103_s14  }
  0x29   : > { %s725_s12 = sshll.u32 %s1111_s16, 9  ;;  %s708_s24 = sshll.u32 %s1235_s11, 5 }
  0x2a   : > { %s1546_s25 = smov (%p1532_p2, %s32_s25), 0  ;;  %s1244_s30 = scalar_lea.hbm %s1520_s0, %s725_s12 }
  0x2b   : > { %s44_s22 = ssub.s32 %s1111_s16, %s1546_s25  ;;  %s185_s26 = scalar_lea.vmem [#allocation3], %s708_s24 }
  0x2c   : > { %p46_p5 = scmp.eq.s32.totalorder %s44_s22, 0  ;;  %s195_s4 = sshll.u32 %s185_s26, 4  ;;  %s1259_s4 = int_to_ptr.vmem [resolvable:$true] %s195_s4 }
  0x2d   : > { %p1533_p6 = scmp.ne.s32.totalorder %s1531_s27, 0  ;;  %p1534_p9 = scmp.lt.s32.totalorder %s1115_s17, 2 }
  0x2e   : > { %s1249_s23 = scalar_select %p46_p5, %s1103_s14, %s48_s19  }
  0x2f   : > { %p1255_p10 = pnand %p1534_p9, %p1533_p6  ;;  %s711_s6 = sshll.u32 %s1235_s11, 10 }
  0x30   : > { %s182_s7 = scalar_lea.sflag [#allocation4], %s1235_s11  ;;  %s967_s8 = scalar_lea.hbm %s1244_s30, 512 }
  0x31   : > { %p968_p11 = scmp.ne.s32.totalorder %s1244_s30, %s967_s8  ;;  %p969_p12 = pneg %p1255_p10 }
  0x32   : > { %s972_s9 = scalar_lea.hbm %s1520_s0, 1024  ;;  %p973_p3 = scmp.lt.u32.totalorder %s1244_s30, %s1520_s0 }
  0x33   : > { %p970_p13 = pnand %p969_p12, %p968_p11  ;;  %p974_p4 = scmp.lt.u32.totalorder %s972_s9, %s967_s8 }
  0x34   : > { %p976_p7 = scmp.lt.u32.totalorder %s967_s8, %s1244_s30 }
  0x35   : > { %p971_p1 = pneg %p970_p13  ;;  %p975_p0 = por %p974_p4, %p973_p3 }
  0x37   : > { %p977_p8 = por %p976_p7, %p975_p0 }
  0x39   : > { %p978_p2 = pnand %p977_p8, %p971_p1 }
  0x3b   : > { %981 = shalt.err (!%p978_p2)
}
  0x3c   : > { %s982_s22 = scalar_lea.vmem %s1259_s4, 512  ;;  %s1118_s24 = smov [#allocation3]  }
  0x3d   : > { %p983_p5 = scmp.ne.s32.totalorder %s1259_s4, %s982_s22  ;;  %s987_s28 = sshll.u32 %s1118_s24, 4  ;;  %s988_s28 = int_to_ptr.vmem [resolvable:$false] %s987_s28 }
  0x3e   : > { %s989_s29 = scalar_lea.vmem %s988_s28, 1024  ;;  %p990_p11 = scmp.lt.s32.totalorder %s1259_s4, %s988_s28 }
  0x3f   : > { %p985_p6 = pnand %p983_p5, %p969_p12  ;;  %p991_p13 = scmp.lt.s32.totalorder %s989_s29, %s982_s22 }
  0x41   : > { %p986_p9 = pneg %p985_p6  ;;  %p992_p3 = por %p991_p13, %p990_p11 }
  0x43   : > { %p993_p4 = pnand %p992_p3, %p986_p9 }
  0x45   : > { %996 = shalt.err (!%p993_p4)
}
  0x46   : > { %877 = dma.hbm_to_vmem [thread:$0]  (!%p1255_p10), %s1244_s30, 512, %s1259_s4, %s182_s7  }
  0x47   : > { %s727_s26 = sshll.u32 %s1111_s16, 14  ;;  %s206_s8 = scalar_lea.vmem [#allocation6], %s711_s6 }
  0x48   : > { %s216_s19 = sshll.u32 %s206_s8, 4  ;;  %s202_s27 = sand.u32 1, %s1115_s17   ;;  %s1291_s19 = int_to_ptr.vmem [resolvable:$true] %s216_s19 }
  0x49   : > { %s1297_s12 = scalar_lea.hbm %s1521_s1, %s727_s26  ;;  %s1299_s22 = scalar_lea.sflag [#allocation7], %s202_s27 }
  0x4a   : > { %s997_s24 = scalar_lea.hbm %s1297_s12, 16384  ;;  %s1002_s4 = scalar_lea.hbm %s1521_s1, 32768 }
  0x4b   : > { %p998_p1 = scmp.ne.s32.totalorder %s1297_s12, %s997_s24  ;;  %p1003_p8 = scmp.lt.u32.totalorder %s1297_s12, %s1521_s1 }
  0x4c   : > { %p1004_p2 = scmp.lt.u32.totalorder %s1002_s4, %s997_s24  ;;  %p1006_p6 = scmp.lt.u32.totalorder %s997_s24, %s1297_s12 }
  0x4d   : > { %p1000_p0 = pnand %p998_p1, %p969_p12 }
  0x4e   : > { %p1005_p5 = por %p1004_p2, %p1003_p8 }
  0x4f   : > { %p1001_p7 = pneg %p1000_p0 }
  0x50   : > { %p1007_p9 = por %p1006_p6, %p1005_p5 }
  0x52   : > { %p1008_p11 = pnand %p1007_p9, %p1001_p7 }
  0x54   : > { %1011 = shalt.err (!%p1008_p11)
}
  0x55   : > { %s1012_s28 = scalar_lea.vmem %s1291_s19, 16384  ;;  %s1119_s29 = smov [#allocation6]  }
  0x56   : > { %p1013_p13 = scmp.ne.s32.totalorder %s1291_s19, %s1012_s28  ;;  %s1017_s26 = sshll.u32 %s1119_s29, 4  ;;  %s1018_s26 = int_to_ptr.vmem [resolvable:$false] %s1017_s26 }
  0x57   : > { %s1019_s8 = scalar_lea.vmem %s1018_s26, 32768  ;;  %p1020_p1 = scmp.lt.s32.totalorder %s1291_s19, %s1018_s26 }
  0x58   : > { %p1015_p3 = pnand %p1013_p13, %p969_p12  ;;  %p1021_p0 = scmp.lt.s32.totalorder %s1019_s8, %s1012_s28 }
  0x5a   : > { %p1016_p4 = pneg %p1015_p3  ;;  %p1022_p8 = por %p1021_p0, %p1020_p1 }
  0x5c   : > { %p1023_p2 = pnand %p1022_p8, %p1016_p4 }
  0x5e   : > { %1026 = shalt.err (!%p1023_p2)
}
  0x5f   : > { %s1120_s27 = smov 256   ;;  %s1121_s9 = smov 16  }
  0x60   : > { %880 = dma.hbm_to_vmem [thread:$0]  (!%p1255_p10), %s1297_s12, 16384, %s1291_s19, %s1299_s22, %s1120_s27, %s1120_s27, %s1121_s9  }
  0x61   : > { %p1536_p12 = scmp.ne.s32.totalorder %s1528_s21, 0 }
  0x62   : > { %s230_s10 = sand.u32 (!%p1536_p12), 1, %s1099_s13   ;;  %p1537_p7 = scmp.ne.s32.totalorder (!%p1536_p12), %s1527_s20, 0 }
  0x63   : > { %228 = sbr.rel (%p1536_p12) target bundleno = 445 (0x1bd), region = 32  ;;  %s716_s24 = sshll.u32 (!%p1536_p12), %s230_s10, 5 }
  0x64   : > { %s231_s11 = scalar_lea.sflag (!%p1536_p12), [#allocation4], %s230_s10  ;;  %s1328_s30 = scalar_lea.vmem (!%p1536_p12), [#allocation3], %s716_s24 }
  0x6a   : > { %1078 = dma.done.wait (%p1537_p7), %s231_s11, 512  }
  0x6b   : > { %1080 = vsyncadd (%p1537_p7), %s231_s11, 4294966784  ;;  %s239_s4 = sand.u32 1, %s1173_s18   ;;  %s717_s5 = sshll.u32 %s230_s10, 10 }
  0x6c   : > { %s240_s19 = scalar_lea.sflag [#allocation7], %s239_s4  ;;  %s1335_s12 = scalar_lea.vmem [#allocation6], %s717_s5 }
  0x6d   : > { %1082 = dma.done.wait (%p1537_p7), %s240_s19, 16384  }
  0x6e   : > { %1084 = vsyncadd (%p1537_p7), %s240_s19, 4294950912  ;;  %p1538_p10 = scmp.eq.s32.totalorder %s1173_s18, 0 }
  0x70   : > { %1086 = dma.done.wait (%p1538_p10), [#allocation7], 32   ;;  %p1539_p5 = pmov %p1538_p10 }
  0x71   : > { %p719_p6 = scmp.ne.s32.totalorder %s1107_s15, 0 }
  0x72   : > { %1088 = vsyncadd (%p1539_p5), [#allocation7], 4294967264  ;;  %v1122_v0 = vmov (!%p719_p6), 0.0  }
  0x73   : > { %278 = sbr.rel (%p719_p6) target bundleno = 122 (0x7a), region = 48  ;;  %279 = vst [vmem:[#allocation2] sm:$0xff] (!%p719_p6), %v1122_v0  ;;  %280 = vst [vmem:[#allocation2 + $0x8] sm:$0xff] (!%p719_p6), %v1122_v0 }
  0x7a PF: > { %v288_v1 = vld [vmem:[%s1335_s12 + $0x8] sm:$0xff]  ;;  %v290_v2 = vld [vmem:[%s1335_s12 + $0x18] sm:$0xff]  ;;  %v287_v6 = vld [vmem:[%s1335_s12] sm:$0xff]  ;;  %p720_p9 = scmp.ne.s32.totalorder %s1107_s15, 1 }
  0x7b   : > { %v352_v3 = vld [vmem:[%s1335_s12 + $0x208] sm:$0xff]  ;;  %v728_v4 = vpack.c.bf16 %v290_v2, %v288_v1  ;;  %v354_v5 = vld [vmem:[%s1335_s12 + $0x218] sm:$0xff]  ;;  %v289_v7 = vld [vmem:[%s1335_s12 + $0x10] sm:$0xff] }
  0x7c   : > { %v792_v8 = vpack.c.bf16 %v354_v5, %v352_v3  ;;  %v730_v9 = vpack.c.bf16 %v289_v7, %v287_v6  ;;  %v351_v10 = vld [vmem:[%s1335_s12 + $0x200] sm:$0xff]  ;;  %v353_v11 = vld [vmem:[%s1335_s12 + $0x210] sm:$0xff]  ;;  %v292_v12 = vld [vmem:[%s1335_s12 + $0x28] sm:$0xff] }
  0x7d   : > { %729 = vmatprep.subr.bf16.mxu1 %v728_v4  ;;  %v794_v13 = vpack.c.bf16 %v353_v11, %v351_v10  ;;  %v294_v14 = vld [vmem:[%s1335_s12 + $0x38] sm:$0xff]  ;;  %v356_v15 = vld [vmem:[%s1335_s12 + $0x228] sm:$0xff]  ;;  %v291_v19 = vld [vmem:[%s1335_s12 + $0x20] sm:$0xff] }
  0x7e   : > { %v358_v16 = vld [vmem:[%s1335_s12 + $0x238] sm:$0xff]  ;;  %793 = vmatprep.subr.bf16.mxu0 %v792_v8  ;;  %731 = vmatpush1.bf16.msra.mxu1 %v730_v9  ;;  %v732_v17 = vpack.c.bf16 %v294_v14, %v292_v12  ;;  %v293_v20 = vld [vmem:[%s1335_s12 + $0x30] sm:$0xff]  ;;  %v355_v21 = vld [vmem:[%s1335_s12 + $0x220] sm:$0xff] }
  0x7f   : > { %v796_v18 = vpack.c.bf16 %v358_v16, %v356_v15  ;;  %795 = vmatpush1.bf16.msra.mxu0 %v794_v13  ;;  %v734_v22 = vpack.c.bf16 %v293_v20, %v291_v19  ;;  %v357_v23 = vld [vmem:[%s1335_s12 + $0x230] sm:$0xff]  ;;  %v296_v24 = vld [vmem:[%s1335_s12 + $0x48] sm:$0xff]  ;;  %v298_v25 = vld [vmem:[%s1335_s12 + $0x58] sm:$0xff] }
  0x80   : > { %733 = vmatprep.subr.bf16.mxu1 %v732_v17  ;;  %v798_v26 = vpack.c.bf16 %v357_v23, %v355_v21  ;;  %v736_v27 = vpack.c.bf16 %v298_v25, %v296_v24  ;;  %v360_v28 = vld [vmem:[%s1335_s12 + $0x248] sm:$0xff]  ;;  %v362_v29 = vld [vmem:[%s1335_s12 + $0x258] sm:$0xff]  ;;  %v295_v30 = vld [vmem:[%s1335_s12 + $0x40] sm:$0xff] }
  0x81   : > { %797 = vmatprep.subr.bf16.mxu0 %v796_v18  ;;  %v800_v31 = vpack.c.bf16 %v362_v29, %v360_v28  ;;  %v297_v32 = vld [vmem:[%s1335_s12 + $0x50] sm:$0xff]  ;;  %v359_v33 = vld [vmem:[%s1335_s12 + $0x240] sm:$0xff]  ;;  %v300_v36 = vld [vmem:[%s1335_s12 + $0x68] sm:$0xff] }
  0x82   : > { %v361_v34 = vld [vmem:[%s1335_s12 + $0x250] sm:$0xff]  ;;  %735 = vmatpush1.bf16.msra.mxu1 %v734_v22  ;;  %v738_v35 = vpack.c.bf16 %v297_v32, %v295_v30  ;;  %v302_v37 = vld [vmem:[%s1335_s12 + $0x78] sm:$0xff]  ;;  %v364_v38 = vld [vmem:[%s1335_s12 + $0x268] sm:$0xff] }
  0x83   : > { %799 = vmatpush1.bf16.msra.mxu0 %v798_v26  ;;  %737 = vmatprep.subr.bf16.mxu1 %v736_v27  ;;  %v802_v39 = vpack.c.bf16 %v361_v34, %v359_v33  ;;  %v740_v40 = vpack.c.bf16 %v302_v37, %v300_v36  ;;  %v366_v41 = vld [vmem:[%s1335_s12 + $0x278] sm:$0xff]  ;;  %v299_v42 = vld [vmem:[%s1335_s12 + $0x60] sm:$0xff]  ;;  %v301_v43 = vld [vmem:[%s1335_s12 + $0x70] sm:$0xff] }
  0x84   : > { %801 = vmatprep.subr.bf16.mxu0 %v800_v31  ;;  %v804_v44 = vpack.c.bf16 %v366_v41, %v364_v38  ;;  %v363_v45 = vld [vmem:[%s1335_s12 + $0x260] sm:$0xff]  ;;  %v365_v46 = vld [vmem:[%s1335_s12 + $0x270] sm:$0xff]  ;;  %v304_v47 = vld [vmem:[%s1335_s12 + $0x88] sm:$0xff]  ;;  %v742_v51 = vpack.c.bf16 %v301_v43, %v299_v42 }
  0x85   : > { %v306_v48 = vld [vmem:[%s1335_s12 + $0x98] sm:$0xff]  ;;  %v368_v49 = vld [vmem:[%s1335_s12 + $0x288] sm:$0xff]  ;;  %v806_v52 = vpack.c.bf16 %v365_v46, %v363_v45  ;;  %v303_v54 = vld [vmem:[%s1335_s12 + $0x80] sm:$0xff] }
  0x86   : > { %v370_v50 = vld [vmem:[%s1335_s12 + $0x298] sm:$0xff]  ;;  %739 = vmatpush1.bf16.msra.mxu1 %v738_v35  ;;  %v744_v53 = vpack.c.bf16 %v306_v48, %v304_v47  ;;  %v305_v55 = vld [vmem:[%s1335_s12 + $0x90] sm:$0xff]  ;;  %v367_v56 = vld [vmem:[%s1335_s12 + $0x280] sm:$0xff] }
  0x87   : > { %803 = vmatpush1.bf16.msra.mxu0 %v802_v39  ;;  %741 = vmatprep.subr.bf16.mxu1 %v740_v40  ;;  %v808_v57 = vpack.c.bf16 %v370_v50, %v368_v49  ;;  %v369_v58 = vld [vmem:[%s1335_s12 + $0x290] sm:$0xff]  ;;  %v308_v59 = vld [vmem:[%s1335_s12 + $0xa8] sm:$0xff]  ;;  %v310_v60 = vld [vmem:[%s1335_s12 + $0xb8] sm:$0xff]  ;;  %v746_v63 = vpack.c.bf16 %v305_v55, %v303_v54 }
  0x88   : > { %805 = vmatprep.subr.bf16.mxu0 %v804_v44  ;;  %v372_v61 = vld [vmem:[%s1335_s12 + $0x2a8] sm:$0xff]  ;;  %v374_v62 = vld [vmem:[%s1335_s12 + $0x2b8] sm:$0xff]  ;;  %v810_v0 = vpack.c.bf16 %v369_v58, %v367_v56  ;;  %v748_v1 = vpack.c.bf16 %v310_v60, %v308_v59  ;;  %v307_v2 = vld [vmem:[%s1335_s12 + $0xa0] sm:$0xff] }
  0x89   : > { %v309_v3 = vld [vmem:[%s1335_s12 + $0xb0] sm:$0xff]  ;;  %v371_v4 = vld [vmem:[%s1335_s12 + $0x2a0] sm:$0xff]  ;;  %v812_v5 = vpack.c.bf16 %v374_v62, %v372_v61  ;;  %v312_v7 = vld [vmem:[%s1335_s12 + $0xc8] sm:$0xff] }
  0x8a   : > { %743 = vmatpush1.bf16.msra.mxu1 %v742_v51  ;;  %v373_v6 = vld [vmem:[%s1335_s12 + $0x2b0] sm:$0xff]  ;;  %v314_v8 = vld [vmem:[%s1335_s12 + $0xd8] sm:$0xff]  ;;  %v376_v9 = vld [vmem:[%s1335_s12 + $0x2c8] sm:$0xff]  ;;  %v750_v11 = vpack.c.bf16 %v309_v3, %v307_v2 }
  0x8b   : > { %807 = vmatpush1.bf16.msra.mxu0 %v806_v52  ;;  %745 = vmatprep.subr.bf16.mxu1 %v744_v53  ;;  %v378_v10 = vld [vmem:[%s1335_s12 + $0x2d8] sm:$0xff]  ;;  %v814_v12 = vpack.c.bf16 %v373_v6, %v371_v4  ;;  %v752_v13 = vpack.c.bf16 %v314_v8, %v312_v7  ;;  %v311_v14 = vld [vmem:[%s1335_s12 + $0xc0] sm:$0xff]  ;;  %v313_v15 = vld [vmem:[%s1335_s12 + $0xd0] sm:$0xff] }
  0x8c   : > { %809 = vmatprep.subr.bf16.mxu0 %v808_v57  ;;  %v375_v16 = vld [vmem:[%s1335_s12 + $0x2c0] sm:$0xff]  ;;  %v816_v17 = vpack.c.bf16 %v378_v10, %v376_v9  ;;  %v377_v18 = vld [vmem:[%s1335_s12 + $0x2d0] sm:$0xff]  ;;  %v316_v19 = vld [vmem:[%s1335_s12 + $0xe8] sm:$0xff]  ;;  %v754_v23 = vpack.c.bf16 %v313_v15, %v311_v14 }
  0x8d   : > { %v318_v20 = vld [vmem:[%s1335_s12 + $0xf8] sm:$0xff]  ;;  %v380_v21 = vld [vmem:[%s1335_s12 + $0x2e8] sm:$0xff]  ;;  %v818_v24 = vpack.c.bf16 %v377_v18, %v375_v16  ;;  %v315_v26 = vld [vmem:[%s1335_s12 + $0xe0] sm:$0xff] }
  0x8e   : > { %747 = vmatpush1.bf16.msra.mxu1 %v746_v63  ;;  %v382_v22 = vld [vmem:[%s1335_s12 + $0x2f8] sm:$0xff]  ;;  %v756_v25 = vpack.c.bf16 %v318_v20, %v316_v19  ;;  %v317_v27 = vld [vmem:[%s1335_s12 + $0xf0] sm:$0xff]  ;;  %v379_v28 = vld [vmem:[%s1335_s12 + $0x2e0] sm:$0xff] }
  0x8f   : > { %811 = vmatpush1.bf16.msra.mxu0 %v810_v0  ;;  %749 = vmatprep.subr.bf16.mxu1 %v748_v1  ;;  %v820_v29 = vpack.c.bf16 %v382_v22, %v380_v21  ;;  %v381_v30 = vld [vmem:[%s1335_s12 + $0x2f0] sm:$0xff]  ;;  %v320_v31 = vld [vmem:[%s1335_s12 + $0x108] sm:$0xff]  ;;  %v322_v32 = vld [vmem:[%s1335_s12 + $0x118] sm:$0xff]  ;;  %v758_v35 = vpack.c.bf16 %v317_v27, %v315_v26 }
  0x90   : > { %813 = vmatprep.subr.bf16.mxu0 %v812_v5  ;;  %v384_v33 = vld [vmem:[%s1335_s12 + $0x308] sm:$0xff]  ;;  %v386_v34 = vld [vmem:[%s1335_s12 + $0x318] sm:$0xff]  ;;  %v822_v36 = vpack.c.bf16 %v381_v30, %v379_v28  ;;  %v760_v37 = vpack.c.bf16 %v322_v32, %v320_v31  ;;  %v319_v38 = vld [vmem:[%s1335_s12 + $0x100] sm:$0xff] }
  0x91   : > { %v321_v39 = vld [vmem:[%s1335_s12 + $0x110] sm:$0xff]  ;;  %v383_v40 = vld [vmem:[%s1335_s12 + $0x300] sm:$0xff]  ;;  %v824_v41 = vpack.c.bf16 %v386_v34, %v384_v33  ;;  %v324_v43 = vld [vmem:[%s1335_s12 + $0x128] sm:$0xff] }
  0x92   : > { %751 = vmatpush1.bf16.msra.mxu1 %v750_v11  ;;  %v385_v42 = vld [vmem:[%s1335_s12 + $0x310] sm:$0xff]  ;;  %v326_v44 = vld [vmem:[%s1335_s12 + $0x138] sm:$0xff]  ;;  %v388_v45 = vld [vmem:[%s1335_s12 + $0x328] sm:$0xff]  ;;  %v762_v47 = vpack.c.bf16 %v321_v39, %v319_v38 }
  0x93   : > { %815 = vmatpush1.bf16.msra.mxu0 %v814_v12  ;;  %753 = vmatprep.subr.bf16.mxu1 %v752_v13  ;;  %v390_v46 = vld [vmem:[%s1335_s12 + $0x338] sm:$0xff]  ;;  %v826_v48 = vpack.c.bf16 %v385_v42, %v383_v40  ;;  %v764_v49 = vpack.c.bf16 %v326_v44, %v324_v43  ;;  %v323_v50 = vld [vmem:[%s1335_s12 + $0x120] sm:$0xff]  ;;  %v325_v51 = vld [vmem:[%s1335_s12 + $0x130] sm:$0xff] }
  0x94   : > { %817 = vmatprep.subr.bf16.mxu0 %v816_v17  ;;  %v387_v52 = vld [vmem:[%s1335_s12 + $0x320] sm:$0xff]  ;;  %v828_v53 = vpack.c.bf16 %v390_v46, %v388_v45  ;;  %v389_v54 = vld [vmem:[%s1335_s12 + $0x330] sm:$0xff]  ;;  %v328_v55 = vld [vmem:[%s1335_s12 + $0x148] sm:$0xff]  ;;  %v766_v59 = vpack.c.bf16 %v325_v51, %v323_v50 }
  0x95   : > { %v330_v56 = vld [vmem:[%s1335_s12 + $0x158] sm:$0xff]  ;;  %v392_v57 = vld [vmem:[%s1335_s12 + $0x348] sm:$0xff]  ;;  %v830_v60 = vpack.c.bf16 %v389_v54, %v387_v52  ;;  %v327_v62 = vld [vmem:[%s1335_s12 + $0x140] sm:$0xff] }
  0x96   : > { %755 = vmatpush1.bf16.msra.mxu1 %v754_v23  ;;  %v394_v58 = vld [vmem:[%s1335_s12 + $0x358] sm:$0xff]  ;;  %v768_v61 = vpack.c.bf16 %v330_v56, %v328_v55  ;;  %v329_v63 = vld [vmem:[%s1335_s12 + $0x150] sm:$0xff]  ;;  %v391_v0 = vld [vmem:[%s1335_s12 + $0x340] sm:$0xff] }
  0x97   : > { %819 = vmatpush1.bf16.msra.mxu0 %v818_v24  ;;  %757 = vmatprep.subr.bf16.mxu1 %v756_v25  ;;  %v832_v1 = vpack.c.bf16 %v394_v58, %v392_v57  ;;  %v393_v2 = vld [vmem:[%s1335_s12 + $0x350] sm:$0xff]  ;;  %v332_v3 = vld [vmem:[%s1335_s12 + $0x168] sm:$0xff]  ;;  %v334_v4 = vld [vmem:[%s1335_s12 + $0x178] sm:$0xff]  ;;  %v770_v7 = vpack.c.bf16 %v329_v63, %v327_v62 }
  0x98   : > { %821 = vmatprep.subr.bf16.mxu0 %v820_v29  ;;  %v396_v5 = vld [vmem:[%s1335_s12 + $0x368] sm:$0xff]  ;;  %v398_v6 = vld [vmem:[%s1335_s12 + $0x378] sm:$0xff]  ;;  %v331_v8 = vld [vmem:[%s1335_s12 + $0x160] sm:$0xff]  ;;  %v834_v9 = vpack.c.bf16 %v393_v2, %v391_v0  ;;  %v772_v10 = vpack.c.bf16 %v334_v4, %v332_v3 }
  0x99   : > { %v333_v11 = vld [vmem:[%s1335_s12 + $0x170] sm:$0xff]  ;;  %v395_v12 = vld [vmem:[%s1335_s12 + $0x360] sm:$0xff]  ;;  %v836_v14 = vpack.c.bf16 %v398_v6, %v396_v5  ;;  %v336_v15 = vld [vmem:[%s1335_s12 + $0x188] sm:$0xff] }
  0x9a   : > { %759 = vmatpush1.bf16.msra.mxu1 %v758_v35  ;;  %v397_v13 = vld [vmem:[%s1335_s12 + $0x370] sm:$0xff]  ;;  %v338_v16 = vld [vmem:[%s1335_s12 + $0x198] sm:$0xff]  ;;  %v284_v17 = vld [vmem:[%s1328_s30 + $0x8] sm:$0xff]  ;;  %v774_v21 = vpack.c.bf16 %v333_v11, %v331_v8 }
  0x9b   : > { %823 = vmatpush1.bf16.msra.mxu0 %v822_v36  ;;  %761 = vmatprep.subr.bf16.mxu1 %v760_v37  ;;  %v400_v18 = vld [vmem:[%s1335_s12 + $0x388] sm:$0xff]  ;;  %v402_v19 = vld [vmem:[%s1335_s12 + $0x398] sm:$0xff]  ;;  %v838_v22 = vpack.c.bf16 %v397_v13, %v395_v12  ;;  %v776_v23 = vpack.c.bf16 %v338_v16, %v336_v15  ;;  %v335_v24 = vld [vmem:[%s1335_s12 + $0x180] sm:$0xff]  ;;  %v569_v15 = vlaneseq (!%p720_p9) }
  0x9c   : > { %825 = vmatprep.subr.bf16.mxu0 %v824_v41  ;;  %479 = vmatprep.mubr.f32.mxu1 %v284_v17  ;;  %v286_v20 = vld [vmem:[%s1328_s30 + $0x18] sm:$0xff]  ;;  %v337_v25 = vld [vmem:[%s1335_s12 + $0x190] sm:$0xff]  ;;  %v399_v26 = vld [vmem:[%s1335_s12 + $0x380] sm:$0xff]  ;;  %v840_v27 = vpack.c.bf16 %v402_v19, %v400_v18 }
  0x9d   : > { %550 = vmatprep.mubr.f32.mxu0 %v286_v20  ;;  %v401_v28 = vld [vmem:[%s1335_s12 + $0x390] sm:$0xff]  ;;  %v340_v29 = vld [vmem:[%s1335_s12 + $0x1a8] sm:$0xff]  ;;  %v342_v30 = vld [vmem:[%s1335_s12 + $0x1b8] sm:$0xff]  ;;  %v778_v33 = vpack.c.bf16 %v337_v25, %v335_v24  ;;  %v570_v16 = vshrl.u32 (!%p720_p9), %v569_v15, 7 }
  0x9e   : > { %763 = vmatpush1.bf16.msra.mxu1 %v762_v47  ;;  %v404_v31 = vld [vmem:[%s1335_s12 + $0x3a8] sm:$0xff]  ;;  %v406_v32 = vld [vmem:[%s1335_s12 + $0x3b8] sm:$0xff]  ;;  %v842_v34 = vpack.c.bf16 %v401_v28, %v399_v26  ;;  %v780_v35 = vpack.c.bf16 %v342_v30, %v340_v29  ;;  %v339_v36 = vld [vmem:[%s1335_s12 + $0x1a0] sm:$0xff] }
  0x9f   : > { %827 = vmatpush1.bf16.msra.mxu0 %v826_v48  ;;  %765 = vmatprep.subr.bf16.mxu1 %v764_v49  ;;  %v341_v37 = vld [vmem:[%s1335_s12 + $0x1b0] sm:$0xff]  ;;  %v403_v38 = vld [vmem:[%s1335_s12 + $0x3a0] sm:$0xff]  ;;  %v844_v39 = vpack.c.bf16 %v406_v32, %v404_v31  ;;  %v344_v41 = vld [vmem:[%s1335_s12 + $0x1c8] sm:$0xff]  ;;  %v571_v18 = vsub.s32 (!%p720_p9), 0, %v570_v16  ;;  %v575_v19 = vsub.s32 (!%p720_p9), 1, %v570_v16 }
  0xa0   : > { %829 = vmatprep.subr.bf16.mxu0 %v828_v53  ;;  %v405_v40 = vld [vmem:[%s1335_s12 + $0x3b0] sm:$0xff]  ;;  %v346_v42 = vld [vmem:[%s1335_s12 + $0x1d8] sm:$0xff]  ;;  %v408_v43 = vld [vmem:[%s1335_s12 + $0x3c8] sm:$0xff]  ;;  %v782_v45 = vpack.c.bf16 %v341_v37, %v339_v36 }
  0xa1   : > { %v410_v44 = vld [vmem:[%s1335_s12 + $0x3d8] sm:$0xff]  ;;  %v846_v46 = vpack.c.bf16 %v405_v40, %v403_v38  ;;  %v784_v47 = vpack.c.bf16 %v346_v42, %v344_v41  ;;  %v343_v48 = vld [vmem:[%s1335_s12 + $0x1c0] sm:$0xff]  ;;  %v345_v49 = vld [vmem:[%s1335_s12 + $0x1d0] sm:$0xff] }
  0xa2   : > { %767 = vmatpush1.bf16.msra.mxu1 %v766_v59  ;;  %v407_v50 = vld [vmem:[%s1335_s12 + $0x3c0] sm:$0xff]  ;;  %v848_v51 = vpack.c.bf16 %v410_v44, %v408_v43  ;;  %v409_v52 = vld [vmem:[%s1335_s12 + $0x3d0] sm:$0xff]  ;;  %v348_v53 = vld [vmem:[%s1335_s12 + $0x1e8] sm:$0xff]  ;;  %v786_v57 = vpack.c.bf16 %v345_v49, %v343_v48 }
  0xa3   : > { %831 = vmatpush1.bf16.msra.mxu0 %v830_v60  ;;  %769 = vmatprep.subr.bf16.mxu1 %v768_v61  ;;  %v350_v54 = vld [vmem:[%s1335_s12 + $0x1f8] sm:$0xff]  ;;  %v412_v55 = vld [vmem:[%s1335_s12 + $0x3e8] sm:$0xff]  ;;  %v850_v58 = vpack.c.bf16 %v409_v52, %v407_v50  ;;  %v347_v60 = vld [vmem:[%s1335_s12 + $0x1e0] sm:$0xff] }
  0xa4   : > { %833 = vmatprep.subr.bf16.mxu0 %v832_v1  ;;  %v414_v56 = vld [vmem:[%s1335_s12 + $0x3f8] sm:$0xff]  ;;  %v788_v59 = vpack.c.bf16 %v350_v54, %v348_v53  ;;  %v349_v61 = vld [vmem:[%s1335_s12 + $0x1f0] sm:$0xff]  ;;  %v411_v63 = vld [vmem:[%s1335_s12 + $0x3e0] sm:$0xff] }
  0xa5   : > { %v852_v62 = vpack.c.bf16 %v414_v56, %v412_v55  ;;  %v413_v0 = vld [vmem:[%s1335_s12 + $0x3f0] sm:$0xff]  ;;  %v790_v1 = vpack.c.bf16 %v349_v61, %v347_v60  ;;  %v283_v3 = vld [vmem:[%s1328_s30] sm:$0xff] }
  0xa6   : > { %771 = vmatpush1.bf16.msra.mxu1 %v770_v7  ;;  %v854_v2 = vpack.c.bf16 %v413_v0, %v411_v63  ;;  %v285_v4 = vld [vmem:[%s1328_s30 + $0x10] sm:$0xff]  ;;  %v567_v17 = vld [vmem:[#allocation8] sm:$0x3] (!%p720_p9) }
  0xa7   : > { %835 = vmatpush1.bf16.msra.mxu0 %v834_v9  ;;  %773 = vmatprep.subr.bf16.mxu1 %v772_v10  ;;  %v281_v6 = vld [vmem:[#allocation2] sm:$0xff]  ;;  %v282_v10 = vld [vmem:[#allocation2 + $0x8] sm:$0xff] }
  0xa8   : > { %837 = vmatprep.subr.bf16.mxu0 %v836_v14 }
  0xaa   : > { %775 = vmatpush1.bf16.msra.mxu1 %v774_v21 }
  0xab   : > { %839 = vmatpush1.bf16.msra.mxu0 %v838_v22  ;;  %777 = vmatprep.subr.bf16.mxu1 %v776_v23  ;;  %v572_v22 = vrot.slane (!%p720_p9), %v567_v17, %v571_v18  ;;  %v576_v23 = vrot.slane (!%p720_p9), %v567_v17, %v575_v19 }
  0xac   : > { %841 = vmatprep.subr.bf16.mxu0 %v840_v27 }
  0xae   : > { %779 = vmatpush1.bf16.msra.mxu1 %v778_v33 }
  0xaf   : > { %843 = vmatpush1.bf16.msra.mxu0 %v842_v34  ;;  %781 = vmatprep.subr.bf16.mxu1 %v780_v35 }
  0xb0   : > { %845 = vmatprep.subr.bf16.mxu0 %v844_v39 }
  0xb2   : > { %783 = vmatpush1.bf16.msra.mxu1 %v782_v45 }
  0xb3   : > { %847 = vmatpush1.bf16.msra.mxu0 %v846_v46  ;;  %785 = vmatprep.subr.bf16.mxu1 %v784_v47 }
  0xb4   : > { %849 = vmatprep.subr.bf16.mxu0 %v848_v51 }
  0xb6   : > { %787 = vmatpush1.bf16.msra.mxu1 %v786_v57 }
  0xb7   : > { %851 = vmatpush1.bf16.msra.mxu0 %v850_v58  ;;  %789 = vmatprep.subr.bf16.mxu1 %v788_v59 }
  0xb8   : > { %853 = vmatprep.subr.bf16.mxu0 %v852_v62 }
  0xba   : > { %791 = vmatpush1.bf16.msra.mxu1 %v790_v1 }
  0xbb   : > { %855 = vmatpush1.bf16.msra.mxu0 %v854_v2 }
  0xbd   : > { %480 = vmatmul.mubr.f32.vlgmr.msra.gmra.mrb[0].mxu1 %v283_v3 }
  0xbe   : > { %551 = vmatmul.mubr.f32.vlgmr.msra.gmra.mrb[0].mxu0 %v285_v4 }
 0x190   : > { %v481_v5 = vpop.f32.mrb[0].mxu1 }
 0x191   : > { %v552_v7 = vpop.f32.mrb[0].mxu0  ;;  %v483_v8 = vpop.f32.mrb[1].mxu1  ;;  %564 = sbr.rel (%p720_p9) target bundleno = 420 (0x1a4), region = 52 }
 0x192   : > { %v553_v9 = vadd.f32 %v552_v7, %v481_v5  ;;  %v554_v11 = vpop.f32.mrb[1].mxu0 }
 0x193   : > { %v555_v12 = vadd.f32 %v554_v11, %v483_v8 }
 0x194   : > { %v557_v13 = vadd.f32 %v553_v9, %v281_v6 }
 0x195   : > { %v558_v14 = vadd.f32 %v555_v12, %v282_v10 }
 0x196   : > { %559 = vst [vmem:[#allocation2] sm:$0xff] %v557_v13 }
 0x197   : > { %560 = vst [vmem:[#allocation2 + $0x8] sm:$0xff] %v558_v14 }
 0x19d   : > { %v565_v20 = vld [vmem:[#allocation2] sm:$0xff] }
 0x19e   : > { %v566_v21 = vld [vmem:[#allocation2 + $0x8] sm:$0xff]  ;;  %v579_v24 = vadd.f32 %v572_v22, %v565_v20 }
 0x19f   : > { %v580_v25 = vadd.f32 %v576_v23, %v566_v21 }
 0x1a0   : > { %v581_v26 = vmax.f32 %v579_v24, 0.0 }
 0x1a1   : > { %v582_v27 = vmax.f32 %v580_v25, 0.0 }
 0x1a2   : > { %583 = vst [vmem:[#allocation9] sm:$0xff] %v581_v26 }
 0x1a3   : > { %584 = vst [vmem:[#allocation9 + $0x8] sm:$0xff] %v582_v27 }
 0x1a4 PF: > { %p884_p11 = scmp.eq.s32.totalorder %s1173_s18, 1  ;;  %s1123_s15 = smov [#allocation9]  }
 0x1a5   : > { %s597_s20 = sshll.u32 %s1123_s15, 4  ;;  %s598_s20 = int_to_ptr.vmem [resolvable:$true] %s597_s20 }
 0x1a6   : > { %s1027_s21 = scalar_lea.vmem %s598_s20, 256  ;;  %p1034_p1 = scmp.lt.s32.totalorder %s598_s20, %s598_s20 }
 0x1a7   : > { %p1028_p13 = scmp.ne.s32.totalorder %s598_s20, %s1027_s21  ;;  %p1035_p0 = scmp.lt.s32.totalorder %s1027_s21, %s1027_s21 }
 0x1a9   : > { %p1029_p3 = pnand %p1028_p13, %p884_p11  ;;  %p1036_p8 = por %p1035_p0, %p1034_p1 }
 0x1ab   : > { %p1030_p4 = pneg %p1029_p3 }
 0x1ad   : > { %p1037_p2 = pnand %p1036_p8, %p1030_p4 }
 0x1af   : > { %1040 = shalt.err (!%p1037_p2)
}
 0x1b0   : > { %s1041_s7 = scalar_lea.hbm %s1523_s3, 256 }
 0x1b1   : > { %p1042_p12 = scmp.ne.s32.totalorder %s1523_s3, %s1041_s7  ;;  %p1047_p5 = scmp.lt.u32.totalorder %s1041_s7, %s1523_s3 }
 0x1b3   : > { %p1043_p7 = pnand %p1042_p12, %p884_p11 }
 0x1b5   : > { %p1044_p10 = pneg %p1043_p7 }
 0x1b7   : > { %p1049_p6 = pnand %p1047_p5, %p1044_p10 }
 0x1b9   : > { %1052 = shalt.err (!%p1049_p6)
}
 0x1ba   : > { %867 = dma.vmem_to_hbm [thread:$0]  (%p884_p11), %s598_s20, 256, %s1523_s3, [#allocation5]  }
 0x1bb   : > { %1090 = dma.done.wait (%p884_p11), [#allocation5], 256  }
 0x1bc   : > { %1092 = vsyncadd (%p884_p11), [#allocation5], 4294967040 }
 0x1bd PF: > { %s20_s17 = sadd.s32 1, %s1115_s17   ;;  %s1540_s12 = smov %s1099_s13 }
 0x1be   : > { %p17_p9 = scmp.ge.s32.totalorder %s20_s17, 4   ;;  %s1541_s13 = smov %s1103_s14 }
 0x1bf   : > { %s1542_s14 = smov %s1249_s23  ;;  %s1543_s15 = smov %s1111_s16 }
 0x1c0   : > { %s1544_s16 = smov %s1546_s25  ;;  %19 = sbr.rel (!%p17_p9) target bundleno = 7 (0x7), region = 96 }
 0x1c7   :  { %610 = vsyncpa [#allocation4], 1 }
 0x1c8   :  { %612 = vsyncpa [#allocation4 + $0x1], 1 }
 0x1c9   :  { %613 = vsyncpa [#allocation7], 1 }
 0x1ca   :  { %615 = vsyncpa [#allocation7 + $0x1], 1 }
 0x1cb   :  { %616 = vsyncpa [#allocation5], 1 }
 0x1cc   :  { %618 = vsyncpa [#allocation5 + $0x1], 1 }

</bundles_post_ra>
